<compile_context>
chip_gen: v7x
topology: tpu7x:2x2x1
jax: 0.10.0
libtpu: 0.0.40
codegen_flags: <defaults>
</compile_context>

<pallas_src>
import functools

import jax
import jax.numpy as jnp
from jax.experimental import pallas as pl
from jax.experimental.pallas import tpu as pltpu


def _maxpool_slab_kernel(x_ref, o_ref, *, k, s, ho_t, wo):
    """One grid step = (batch, H-tile).

    x_ref: (1, Ht_in, W, C) VMEM block, o_ref: (1, ho_t, wo, C) VMEM block.
    acc starts as the (dh=0, dw=0) strided slab; the remaining k*k-1 offsets are
    elementwise (VPU) maxima over output-sized slabs. Single dense store at the end.
    """
    acc = x_ref[:, pl.ds(0, ho_t, stride=s), pl.ds(0, wo, stride=s), :]
    for dh in range(k):
        for dw in range(k):
            if dh == 0 and dw == 0:
                continue
            acc = jnp.maximum(
                acc,
                x_ref[:, pl.ds(dh, ho_t, stride=s), pl.ds(dw, wo, stride=s), :],
            )
    o_ref[...] = acc  # one dense (1, ho_t, wo, C) store


@functools.partial(jax.jit, static_argnames=("kernel_size", "stride"))
def maxpool2d_nchw(x_nchw, kernel_size=3, stride=None):
    """MaxPool2d, ceil_mode=False (floor), no padding — matches torch.nn.MaxPool2d(3)."""
    if stride is None:
        stride = kernel_size  # PyTorch default: stride = kernel_size
    k, s = kernel_size, stride
    n, c, h, w = x_nchw.shape
    h_out = (h - k) // s + 1
    w_out = (w - k) // s + 1

    # NCHW -> NHWC so C sits on the lane dimension (allow_input_fusion lets XLA fold this
    # transpose into the pallas_call input).
    x_nhwc = jnp.transpose(x_nchw, (0, 2, 3, 1))
    itemsize = x_nchw.dtype.itemsize

    if s == k:
        # Non-overlapping windows -> exact H tiling (input tile rows = ht_out * k).
        bytes_per_out_row = (k * w + w_out) * c * itemsize
        target_bytes = 1 << 20  # ~1 MiB per in+out block pair (VMEM-safe on all generations)
        ht_out = max(1, min(h_out, target_bytes // max(1, bytes_per_out_row)))
        if n == 1 and h_out >= 2:
            # Keep >= 2 parallel grid steps so both v7x TensorCores get work at batch=1.
            ht_out = min(ht_out, -(-h_out // 2))
    else:
        # Overlapping windows can't be expressed by blocked index maps -> whole H per step.
        ht_out = h_out
    n_h_tiles = -(-h_out // ht_out)
    ht_in = (ht_out - 1) * s + k

    kernel = functools.partial(
        _maxpool_slab_kernel, k=k, s=s, ho_t=ht_out, wo=w_out
    )
    out_nhwc = pl.pallas_call(
        kernel,
        out_shape=jax.ShapeDtypeStruct((n, h_out, w_out, c), x_nhwc.dtype),
        grid=(n, n_h_tiles),
        in_specs=[pl.BlockSpec((1, ht_in, w, c), lambda b, t: (b, t, 0, 0))],
        out_specs=pl.BlockSpec((1, ht_out, w_out, c), lambda b, t: (b, t, 0, 0)),
        compiler_params=pltpu.CompilerParams(
            dimension_semantics=("parallel", "parallel"),
            allow_input_fusion=[True],      # let XLA fuse the NCHW->NHWC transpose
            vmem_limit_bytes=32 * 1024 * 1024,
        ),
    )(x_nhwc)

    # NHWC -> NCHW to match the PyTorch output convention.
    return jnp.transpose(out_nhwc, (0, 3, 1, 2))


class TuduiPallas:
    """Equivalent of the PyTorch Tudui module (MaxPool2d(3, ceil_mode=False)); no parameters."""

    def __call__(self, x_nchw):
        return maxpool2d_nchw(x_nchw, kernel_size=3)


if __name__ == "__main__":
    key = jax.random.PRNGKey(0)
    x = jax.random.normal(key, (2, 4, 16, 16), dtype=jnp.float32)  # NCHW, like PyTorch

    model = TuduiPallas()
    y = jax.block_until_ready(model(x))

    # Pure-JAX reference for the same floor-mode 3x3/stride-3 max pool.
    n, c, h, w = x.shape
    k = 3
    ho, wo = (h - k) // k + 1, (w - k) // k + 1
    ref = x[:, :, : ho * k, : wo * k].reshape(n, c, ho, k, wo, k).max(axis=(3, 5))

    assert y.shape == (n, c, ho, wo), y.shape
    assert jnp.allclose(y, ref), "mismatch vs reference max pool"
    print("KERNEL_OK")
</pallas_src>

<mosaic_0001>
module attributes {stable_mosaic.version = 11 : i64} {
  func.func @_maxpool_slab_kernel(%arg0: i32, %arg1: i32, %arg2: memref<1x15x16x4xf32, #tpu.memory_space<vmem>>, %arg3: memref<1x5x5x4xf32, #tpu.memory_space<vmem>>) attributes {dimension_semantics = [#tpu.dimension_semantics<parallel>, #tpu.dimension_semantics<parallel>], iteration_bounds = array<i64: 2, 1>, scalar_prefetch = 0 : i64, scratch_operands = 0 : i64, tpu.core_type = #tpu.core_type<tc>, window_params = [{transform_indices = @transform_0, window_bounds = array<i64: 1, 15, 16, 4>}, {transform_indices = @transform_1, window_bounds = array<i64: 1, 5, 5, 4>}]} {
    %c0 = arith.constant 0 : index
    %c0_0 = arith.constant 0 : index
    %c0_1 = arith.constant 0 : index
    %c0_2 = arith.constant 0 : index
    %0 = tpu.strided_load %arg2[%c0, %c0_0, %c0_1, %c0_2] {strides = array<i32: 1, 3, 3, 1>} : memref<1x15x16x4xf32, #tpu.memory_space<vmem>>, vector<1x5x5x4xf32>
    %c0_3 = arith.constant 0 : index
    %c0_4 = arith.constant 0 : index
    %c1 = arith.constant 1 : index
    %c0_5 = arith.constant 0 : index
    %1 = tpu.strided_load %arg2[%c0_3, %c0_4, %c1, %c0_5] {strides = array<i32: 1, 3, 3, 1>} : memref<1x15x16x4xf32, #tpu.memory_space<vmem>>, vector<1x5x5x4xf32>
    %2 = arith.maximumf %0, %1 : vector<1x5x5x4xf32>
    %c0_6 = arith.constant 0 : index
    %c0_7 = arith.constant 0 : index
    %c2 = arith.constant 2 : index
    %c0_8 = arith.constant 0 : index
    %3 = tpu.strided_load %arg2[%c0_6, %c0_7, %c2, %c0_8] {strides = array<i32: 1, 3, 3, 1>} : memref<1x15x16x4xf32, #tpu.memory_space<vmem>>, vector<1x5x5x4xf32>
    %4 = arith.maximumf %2, %3 : vector<1x5x5x4xf32>
    %c0_9 = arith.constant 0 : index
    %c1_10 = arith.constant 1 : index
    %c0_11 = arith.constant 0 : index
    %c0_12 = arith.constant 0 : index
    %5 = tpu.strided_load %arg2[%c0_9, %c1_10, %c0_11, %c0_12] {strides = array<i32: 1, 3, 3, 1>} : memref<1x15x16x4xf32, #tpu.memory_space<vmem>>, vector<1x5x5x4xf32>
    %6 = arith.maximumf %4, %5 : vector<1x5x5x4xf32>
    %c0_13 = arith.constant 0 : index
    %c1_14 = arith.constant 1 : index
    %c1_15 = arith.constant 1 : index
    %c0_16 = arith.constant 0 : index
    %7 = tpu.strided_load %arg2[%c0_13, %c1_14, %c1_15, %c0_16] {strides = array<i32: 1, 3, 3, 1>} : memref<1x15x16x4xf32, #tpu.memory_space<vmem>>, vector<1x5x5x4xf32>
    %8 = arith.maximumf %6, %7 : vector<1x5x5x4xf32>
    %c0_17 = arith.constant 0 : index
    %c1_18 = arith.constant 1 : index
    %c2_19 = arith.constant 2 : index
    %c0_20 = arith.constant 0 : index
    %9 = tpu.strided_load %arg2[%c0_17, %c1_18, %c2_19, %c0_20] {strides = array<i32: 1, 3, 3, 1>} : memref<1x15x16x4xf32, #tpu.memory_space<vmem>>, vector<1x5x5x4xf32>
    %10 = arith.maximumf %8, %9 : vector<1x5x5x4xf32>
    %c0_21 = arith.constant 0 : index
    %c2_22 = arith.constant 2 : index
    %c0_23 = arith.constant 0 : index
    %c0_24 = arith.constant 0 : index
    %11 = tpu.strided_load %arg2[%c0_21, %c2_22, %c0_23, %c0_24] {strides = array<i32: 1, 3, 3, 1>} : memref<1x15x16x4xf32, #tpu.memory_space<vmem>>, vector<1x5x5x4xf32>
    %12 = arith.maximumf %10, %11 : vector<1x5x5x4xf32>
    %c0_25 = arith.constant 0 : index
    %c2_26 = arith.constant 2 : index
    %c1_27 = arith.constant 1 : index
    %c0_28 = arith.constant 0 : index
    %13 = tpu.strided_load %arg2[%c0_25, %c2_26, %c1_27, %c0_28] {strides = array<i32: 1, 3, 3, 1>} : memref<1x15x16x4xf32, #tpu.memory_space<vmem>>, vector<1x5x5x4xf32>
    %14 = arith.maximumf %12, %13 : vector<1x5x5x4xf32>
    %c0_29 = arith.constant 0 : index
    %c2_30 = arith.constant 2 : index
    %c2_31 = arith.constant 2 : index
    %c0_32 = arith.constant 0 : index
    %15 = tpu.strided_load %arg2[%c0_29, %c2_30, %c2_31, %c0_32] {strides = array<i32: 1, 3, 3, 1>} : memref<1x15x16x4xf32, #tpu.memory_space<vmem>>, vector<1x5x5x4xf32>
    %16 = arith.maximumf %14, %15 : vector<1x5x5x4xf32>
    %c0_33 = arith.constant 0 : index
    %c0_34 = arith.constant 0 : index
    %c0_35 = arith.constant 0 : index
    %c0_36 = arith.constant 0 : index
    %17 = vector.load %arg3[%c0_33, %c0_34, %c0_35, %c0_36] : memref<1x5x5x4xf32, #tpu.memory_space<vmem>>, vector<1x5x5x4xf32>
    tpu.vector_store %arg3[%c0_33, %c0_34, %c0_35, %c0_36], %16 {strides = array<i32>} : memref<1x5x5x4xf32, #tpu.memory_space<vmem>>, vector<1x5x5x4xf32>,
    return
  }
  func.func @transform_0(%arg0: i32, %arg1: i32) -> (i32, i32, i32, i32) {
    %c0_i32 = arith.constant 0 : i32
    %c0_i32_0 = arith.constant 0 : i32
    %c0_i32_1 = arith.constant 0 : i32
    return %arg0, %arg1, %c0_i32, %c0_i32_0 : i32, i32, i32, i32
  }
  func.func @transform_1(%arg0: i32, %arg1: i32) -> (i32, i32, i32, i32) {
    %c0_i32 = arith.constant 0 : i32
    %c0_i32_0 = arith.constant 0 : i32
    %c0_i32_1 = arith.constant 0 : i32
    return %arg0, %arg1, %c0_i32, %c0_i32_0 : i32, i32, i32, i32
  }
}

</mosaic_0001>

<bundles_post_ra>
// kernel: maxpool2d_nchw.2
= control target key start
LH: loop header
LB: loop body
LE: loop exit
PB: predicated region body
PF: predicated region fallthrough
CT: control target
= control target key end

     0   :  { %s796_s6 = smov 0   ;;  %s798_s7 = smov 0   ;;  %s872_s0 = inlined_call_operand.vmem [shape: f32[2,4,16,16], index: 0, kind: input, shape index: {}]   ;;  %s873_s1 = inlined_call_operand.vmem [shape: f32[2,5,5,4], index: 1, kind: output, shape index: {}]  }
   0x1   :  { %s800_s8 = smov 0  }
   0x2 LB: > { %s23_s9 = sadd.s32 1, %s780_s7  ;;  %p701_p0 = scmp.ge.s32.totalorder %s784_s8, 1  ;;  %s784_s8 = sphi %s800_s8, %s11_s8   ;;  %s780_s7 = sphi %s798_s7, %s875_s7   ;;  %s776_s6 = sphi %s796_s6, %s874_s6  }
   0x3   : > { %p25_p1 = scmp.ge.s32.totalorder %s23_s9, 2  ;;  %p119_p2 = scmp.lt.s32.totalorder %s784_s8, 3 }
   0x5   : > { %s877_s9 = smov (%p25_p1, %s23_s9), 0  ;;  %p120_p3 = pnand %p701_p0, %p119_p2 }
   0x7   : > { %123 = sbr.rel (%p120_p3) target bundleno = 60 (0x3c), region = 24 }
   0xe   : > { %p159_p4 = scmp.lt.s32.totalorder %s776_s6, 1  ;;  %vm573_vm0 = vcmask 28672  }
  0x10   : > { %s879_s6 = smov (!%p159_p4, %s776_s6), 1 }
  0x11   : > { %s736_s10 = sshll.u32 %s879_s6, 8  ;;  %s737_s14 = smul.u32 40, %s879_s6 }
  0x12   : > { %s820_s13 = scalar_lea.vmem %s872_s0, %s736_s10 }
  0x13   : > { %v184_v0 = vld [vmem:[%s820_s13] sm:$0xff]  ;;  %v705_v1 = vld [vmem:[%s820_s13 + $0x8] sm:$0xff]  ;;  %v706_v2 = vld [vmem:[%s820_s13 + $0x10] sm:$0xff]  ;;  %s182_s17 = scalar_lea.vmem %s873_s1, %s737_s14 }
  0x14   : > { %186 = vst [vmem:[#allocation2] sm:$0xff] %v184_v0  ;;  %191 = vst [vmem:[#allocation2 + $0x8] sm:$0xff] %v705_v1  ;;  %v707_v3 = vld [vmem:[%s820_s13 + $0x18] sm:$0xff]  ;;  %v708_v4 = vld [vmem:[%s820_s13 + $0x20] sm:$0xff] }
  0x15   : > { %200 = vst [vmem:[#allocation2 + $0x10] sm:$0xff] %v706_v2  ;;  %v709_v5 = vld [vmem:[%s820_s13 + $0x28] sm:$0xff]  ;;  %209 = vst [vmem:[#allocation2 + $0x18] sm:$0xff] %v707_v3  ;;  %v710_v6 = vld [vmem:[%s820_s13 + $0x30] sm:$0xff] }
  0x16   : > { %218 = vst [vmem:[#allocation2 + $0x20] sm:$0xff] %v708_v4  ;;  %227 = vst [vmem:[#allocation2 + $0x28] sm:$0xff] %v709_v5  ;;  %v711_v7 = vld [vmem:[%s820_s13 + $0x38] sm:$0xff]  ;;  %v712_v8 = vld [vmem:[%s820_s13 + $0x40] sm:$0xff] }
  0x17   : > { %236 = vst [vmem:[#allocation2 + $0x30] sm:$0xff] %v710_v6  ;;  %245 = vst [vmem:[#allocation2 + $0x38] sm:$0xff] %v711_v7  ;;  %v713_v9 = vld [vmem:[%s820_s13 + $0x48] sm:$0xff]  ;;  %v714_v10 = vld [vmem:[%s820_s13 + $0x50] sm:$0xff] }
  0x18   : > { %254 = vst [vmem:[#allocation2 + $0x40] sm:$0xff] %v712_v8  ;;  %v715_v11 = vld [vmem:[%s820_s13 + $0x58] sm:$0xff]  ;;  %263 = vst [vmem:[#allocation2 + $0x48] sm:$0xff] %v713_v9  ;;  %v716_v12 = vld [vmem:[%s820_s13 + $0x60] sm:$0xff] }
  0x19   : > { %272 = vst [vmem:[#allocation2 + $0x50] sm:$0xff] %v714_v10  ;;  %281 = vst [vmem:[#allocation2 + $0x58] sm:$0xff] %v715_v11  ;;  %v717_v13 = vld [vmem:[%s820_s13 + $0x68] sm:$0xff]  ;;  %v718_v14 = vld [vmem:[%s820_s13 + $0x70] sm:$0xff] }
  0x1a   : > { %290 = vst [vmem:[#allocation2 + $0x60] sm:$0xff] %v716_v12  ;;  %299 = vst [vmem:[#allocation2 + $0x68] sm:$0xff] %v717_v13  ;;  %v719_v15 = vld [vmem:[%s820_s13 + $0x78] sm:$0xff]  ;;  %v720_v16 = vld [vmem:[%s820_s13 + $0x80] sm:$0xff] }
  0x1b   : > { %308 = vst [vmem:[#allocation2 + $0x70] sm:$0xff] %v718_v14  ;;  %v721_v17 = vld [vmem:[%s820_s13 + $0x88] sm:$0xff]  ;;  %317 = vst [vmem:[#allocation2 + $0x78] sm:$0xff] %v719_v15  ;;  %v722_v18 = vld [vmem:[%s820_s13 + $0x90] sm:$0xff] }
  0x1c   : > { %326 = vst [vmem:[#allocation2 + $0x80] sm:$0xff] %v720_v16  ;;  %335 = vst [vmem:[#allocation2 + $0x88] sm:$0xff] %v721_v17  ;;  %v723_v19 = vld [vmem:[%s820_s13 + $0x98] sm:$0xff]  ;;  %v724_v20 = vld [vmem:[%s820_s13 + $0xa0] sm:$0xff] }
  0x1d   : > { %344 = vst [vmem:[#allocation2 + $0x90] sm:$0xff] %v722_v18  ;;  %353 = vst [vmem:[#allocation2 + $0x98] sm:$0xff] %v723_v19  ;;  %v725_v21 = vld [vmem:[%s820_s13 + $0xa8] sm:$0xff]  ;;  %v726_v22 = vld [vmem:[%s820_s13 + $0xb0] sm:$0xff] }
  0x1e   : > { %362 = vst [vmem:[#allocation2 + $0xa0] sm:$0xff] %v724_v20  ;;  %v727_v23 = vld [vmem:[%s820_s13 + $0xb8] sm:$0xff]  ;;  %371 = vst [vmem:[#allocation2 + $0xa8] sm:$0xff] %v725_v21  ;;  %v728_v24 = vld [vmem:[%s820_s13 + $0xc0] sm:$0xff] }
  0x1f   : > { %380 = vst [vmem:[#allocation2 + $0xb0] sm:$0xff] %v726_v22  ;;  %389 = vst [vmem:[#allocation2 + $0xb8] sm:$0xff] %v727_v23  ;;  %v729_v25 = vld [vmem:[%s820_s13 + $0xc8] sm:$0xff]  ;;  %v730_v26 = vld [vmem:[%s820_s13 + $0xd0] sm:$0xff] }
  0x20   : > { %398 = vst [vmem:[#allocation2 + $0xc0] sm:$0xff] %v728_v24  ;;  %407 = vst [vmem:[#allocation2 + $0xc8] sm:$0xff] %v729_v25  ;;  %v731_v27 = vld [vmem:[%s820_s13 + $0xd8] sm:$0xff]  ;;  %v732_v28 = vld [vmem:[%s820_s13 + $0xe0] sm:$0xff] }
  0x21   : > { %416 = vst [vmem:[#allocation2 + $0xd0] sm:$0xff] %v730_v26  ;;  %v733_v29 = vld [vmem:[%s820_s13 + $0xe8] sm:$0xff]  ;;  %425 = vst [vmem:[#allocation2 + $0xd8] sm:$0xff] %v731_v27  ;;  %v446_v31 = vld [vmem:[#allocation2 + $0x30] ss:$3 sm:$0x1f] }
  0x22   : > { %434 = vst [vmem:[#allocation2 + $0xe0] sm:$0xff] %v732_v28  ;;  %443 = vst [vmem:[#allocation2 + $0xe8] sm:$0xff] %v733_v29  ;;  %v444_v30 = vld [vmem:[#allocation2] ss:$3 sm:$0x1f] }
  0x23   : > { %v454_v32 = vld [vmem:[#allocation2 + $0x1] ss:$3 sm:$0x1f]  ;;  %v456_v33 = vld [vmem:[#allocation2 + $0x31] ss:$3 sm:$0x1f] }
  0x24   : > { %v448_v34 = vld [vmem:[#allocation2 + $0x60] ss:$3 sm:$0x1f]  ;;  %v458_v35 = vld [vmem:[#allocation2 + $0x61] ss:$3 sm:$0x1f]  ;;  %v463_v36 = vmax.f32 %v444_v30, %v454_v32  ;;  %v464_v37 = vmax.f32 %v446_v31, %v456_v33 }
  0x25   : > { %v465_v38 = vmax.f32 %v448_v34, %v458_v35  ;;  %v469_v39 = vld [vmem:[#allocation2 + $0x2] ss:$3 sm:$0x1f]  ;;  %v471_v40 = vld [vmem:[#allocation2 + $0x32] ss:$3 sm:$0x1f] }
  0x26   : > { %v450_v41 = vld [vmem:[#allocation2 + $0x90] ss:$3 sm:$0x1f]  ;;  %v460_v42 = vld [vmem:[#allocation2 + $0x91] ss:$3 sm:$0x1f]  ;;  %v478_v43 = vmax.f32 %v463_v36, %v469_v39  ;;  %v479_v47 = vmax.f32 %v464_v37, %v471_v40 }
  0x27   : > { %v466_v44 = vmax.f32 %v450_v41, %v460_v42  ;;  %v473_v45 = vld [vmem:[#allocation2 + $0x62] ss:$3 sm:$0x1f]  ;;  %v475_v46 = vld [vmem:[#allocation2 + $0x92] ss:$3 sm:$0x1f] }
  0x28   : > { %v452_v48 = vld [vmem:[#allocation2 + $0xc0] ss:$3 sm:$0x1f]  ;;  %v462_v49 = vld [vmem:[#allocation2 + $0xc1] ss:$3 sm:$0x1f]  ;;  %v480_v50 = vmax.f32 %v465_v38, %v473_v45 }
  0x29   : > { %v467_v51 = vmax.f32 %v452_v48, %v462_v49  ;;  %v477_v52 = vld [vmem:[#allocation2 + $0xc2] ss:$3 sm:$0x1f]  ;;  %v481_v53 = vmax.f32 %v466_v44, %v475_v46  ;;  %v484_v54 = vld [vmem:[#allocation2 + $0x10] ss:$3 sm:$0x1f] }
  0x2a   : > { %v486_v55 = vld [vmem:[#allocation2 + $0x40] ss:$3 sm:$0x1f]  ;;  %v488_v56 = vld [vmem:[#allocation2 + $0x70] ss:$3 sm:$0x1f]  ;;  %v493_v57 = vmax.f32 %v478_v43, %v484_v54 }
  0x2b   : > { %v482_v58 = vmax.f32 %v467_v51, %v477_v52  ;;  %v490_v59 = vld [vmem:[#allocation2 + $0xa0] ss:$3 sm:$0x1f]  ;;  %v492_v60 = vld [vmem:[#allocation2 + $0xd0] ss:$3 sm:$0x1f]  ;;  %v494_v61 = vmax.f32 %v479_v47, %v486_v55  ;;  %v495_v62 = vmax.f32 %v480_v50, %v488_v56 }
  0x2c   : > { %v496_v63 = vmax.f32 %v481_v53, %v490_v59  ;;  %v499_v0 = vld [vmem:[#allocation2 + $0x11] ss:$3 sm:$0x1f]  ;;  %v501_v1 = vld [vmem:[#allocation2 + $0x41] ss:$3 sm:$0x1f] }
  0x2d   : > { %v497_v2 = vmax.f32 %v482_v58, %v492_v60  ;;  %v503_v3 = vld [vmem:[#allocation2 + $0x71] ss:$3 sm:$0x1f]  ;;  %v505_v4 = vld [vmem:[#allocation2 + $0xa1] ss:$3 sm:$0x1f]  ;;  %v508_v5 = vmax.f32 %v493_v57, %v499_v0  ;;  %v509_v6 = vmax.f32 %v494_v61, %v501_v1 }
  0x2e   : > { %v507_v7 = vld [vmem:[#allocation2 + $0xd1] ss:$3 sm:$0x1f]  ;;  %v510_v8 = vmax.f32 %v495_v62, %v503_v3  ;;  %v511_v9 = vmax.f32 %v496_v63, %v505_v4  ;;  %v514_v10 = vld [vmem:[#allocation2 + $0x12] ss:$3 sm:$0x1f] }
  0x2f   : > { %v512_v11 = vmax.f32 %v497_v2, %v507_v7  ;;  %v516_v12 = vld [vmem:[#allocation2 + $0x42] ss:$3 sm:$0x1f]  ;;  %v518_v13 = vld [vmem:[#allocation2 + $0x72] ss:$3 sm:$0x1f]  ;;  %v523_v14 = vmax.f32 %v508_v5, %v514_v10 }
  0x30   : > { %v520_v15 = vld [vmem:[#allocation2 + $0xa2] ss:$3 sm:$0x1f]  ;;  %v522_v16 = vld [vmem:[#allocation2 + $0xd2] ss:$3 sm:$0x1f]  ;;  %v524_v17 = vmax.f32 %v509_v6, %v516_v12  ;;  %v525_v18 = vmax.f32 %v510_v8, %v518_v13 }
  0x31   : > { %v526_v19 = vmax.f32 %v511_v9, %v520_v15  ;;  %v527_v20 = vmax.f32 %v512_v11, %v522_v16  ;;  %v529_v21 = vld [vmem:[#allocation2 + $0x20] ss:$3 sm:$0x1f]  ;;  %v531_v22 = vld [vmem:[#allocation2 + $0x50] ss:$3 sm:$0x1f] }
  0x32   : > { %v533_v23 = vld [vmem:[#allocation2 + $0x80] ss:$3 sm:$0x1f]  ;;  %v535_v24 = vld [vmem:[#allocation2 + $0xb0] ss:$3 sm:$0x1f]  ;;  %v538_v25 = vmax.f32 %v523_v14, %v529_v21  ;;  %v539_v26 = vmax.f32 %v524_v17, %v531_v22 }
  0x33   : > { %v537_v27 = vld [vmem:[#allocation2 + $0xe0] ss:$3 sm:$0x1f]  ;;  %v540_v28 = vmax.f32 %v525_v18, %v533_v23  ;;  %v541_v29 = vmax.f32 %v526_v19, %v535_v24  ;;  %v544_v30 = vld [vmem:[#allocation2 + $0x21] ss:$3 sm:$0x1f] }
  0x34   : > { %v542_v31 = vmax.f32 %v527_v20, %v537_v27  ;;  %v546_v32 = vld [vmem:[#allocation2 + $0x51] ss:$3 sm:$0x1f]  ;;  %v548_v33 = vld [vmem:[#allocation2 + $0x81] ss:$3 sm:$0x1f]  ;;  %v553_v34 = vmax.f32 %v538_v25, %v544_v30 }
  0x35   : > { %v550_v35 = vld [vmem:[#allocation2 + $0xb1] ss:$3 sm:$0x1f]  ;;  %v552_v36 = vld [vmem:[#allocation2 + $0xe1] ss:$3 sm:$0x1f]  ;;  %v554_v37 = vmax.f32 %v539_v26, %v546_v32  ;;  %v555_v38 = vmax.f32 %v540_v28, %v548_v33 }
  0x36   : > { %v556_v39 = vmax.f32 %v541_v29, %v550_v35  ;;  %v557_v40 = vmax.f32 %v542_v31, %v552_v36  ;;  %v559_v41 = vld [vmem:[#allocation2 + $0x22] ss:$3 sm:$0x1f]  ;;  %v561_v42 = vld [vmem:[#allocation2 + $0x52] ss:$3 sm:$0x1f] }
  0x37   : > { %v563_v43 = vld [vmem:[#allocation2 + $0x82] ss:$3 sm:$0x1f]  ;;  %v565_v44 = vld [vmem:[#allocation2 + $0xb2] ss:$3 sm:$0x1f]  ;;  %v568_v45 = vmax.f32 %v553_v34, %v559_v41  ;;  %v569_v46 = vmax.f32 %v554_v37, %v561_v42 }
  0x38   : > { %v567_v47 = vld [vmem:[#allocation2 + $0xe2] ss:$3 sm:$0x1f]  ;;  %v570_v48 = vmax.f32 %v555_v38, %v563_v43  ;;  %v571_v49 = vmax.f32 %v556_v39, %v565_v44 }
  0x39   : > { %v572_v50 = vmax.f32 %v557_v40, %v567_v47  ;;  %574 = vst.msk [vmem:[%s182_s17] sm:$0x1f] %vm573_vm0, %v568_v45  ;;  %575 = vst.msk [vmem:[%s182_s17 + $0x8] sm:$0x1f] %vm573_vm0, %v569_v46 }
  0x3a   : > { %576 = vst.msk [vmem:[%s182_s17 + $0x10] sm:$0x1f] %vm573_vm0, %v570_v48  ;;  %577 = vst.msk [vmem:[%s182_s17 + $0x18] sm:$0x1f] %vm573_vm0, %v571_v49 }
  0x3b   : > { %578 = vst.msk [vmem:[%s182_s17 + $0x20] sm:$0x1f] %vm573_vm0, %v572_v50 }
  0x3c PF: > { %s11_s8 = sadd.s32 1, %s784_s8   ;;  %s874_s6 = smov %s780_s7 }
  0x3d   : > { %p8_p5 = scmp.ge.s32.totalorder %s11_s8, 4   ;;  %s875_s7 = smov %s877_s9 }
  0x3f   :  { %10 = sbr.rel (!%p8_p5) target bundleno = 2 (0x2), region = 156 }

</bundles_post_ra>
